<compile_context>
chip_gen: v7x
topology: tpu7x:2x2x1
jax: 0.10.0
libtpu: 0.0.40
codegen_flags: <defaults>
</compile_context>

<pallas_src>
import jax
import jax.numpy as jnp
from jax.experimental import pallas as pl
from jax.experimental.pallas import tpu as pltpu


def _pos_emb_kernel(pe_ref, out_ref):
    # Pure pass-through of the positional-embedding tile.
    out_ref[...] = pe_ref[...]


def _sublane_multiple(itemsize: int) -> int:
    # Packed sublane tile: f32 -> 8 rows, bf16 -> 16, int8/fp8 -> 32.
    return {4: 8, 2: 16, 1: 32}.get(itemsize, 8)


def positional_embedding_forward(pos_emb, *, vmem_tile_bytes=8 << 20):
    """Pallas implementation of PositionalEmbedding.forward().

    pos_emb: (1, num_patches, embedding_dim) learned parameter.
    Returns the same values, materialized through an aliased Pallas copy.

    Note: the truly free path is `return pos_emb` (the module is an identity);
    this wrapper exists so the op runs through the Pallas pipeline.
    """
    one, num_patches, embedding_dim = pos_emb.shape
    assert one == 1, "expected leading batch dim of size 1"
    dtype = pos_emb.dtype
    itemsize = jnp.dtype(dtype).itemsize

    # Collapse the size-1 batch dim: kernel works on a 2D (P, D) slab with the
    # embedding dim on the lane (fast) axis.
    x = pos_emb.reshape(num_patches, embedding_dim)

    sublane = _sublane_multiple(itemsize)
    row_bytes = max(1, embedding_dim * itemsize)

    # Largest dtype-aligned row tile that fits the per-tile VMEM budget
    # (budget chosen so 2x double-buffered in + out tiles stay far under the
    # 32 MiB scoped VMEM default, which is also v7x-safe).
    tile_p = min(num_patches, max(sublane, vmem_tile_bytes // row_bytes))
    tile_p = max(sublane, (tile_p // sublane) * sublane)

    if tile_p >= num_patches:
        # Single block covering the whole array: no per-step overhead and no
        # (8,128) divisibility constraint (full-extent block).
        tile_p = num_patches

    grid = (pl.cdiv(num_patches, tile_p),)

    out2d = pl.pallas_call(
        _pos_emb_kernel,
        out_shape=jax.ShapeDtypeStruct((num_patches, embedding_dim), dtype),
        grid=grid,
        in_specs=[pl.BlockSpec((tile_p, embedding_dim), lambda i: (i, 0))],
        out_specs=pl.BlockSpec((tile_p, embedding_dim), lambda i: (i, 0)),
        # Output aliases the parameter buffer: no extra HBM allocation.
        input_output_aliases={0: 0},
        compiler_params=pltpu.CompilerParams(
            # No-op on 1-TC chips; lets v7x shard the grid across both cores
            # when the grid has more than one step.
            dimension_semantics=("parallel",),
        ),
    )(x)

    return out2d.reshape(1, num_patches, embedding_dim)


def make_positional_embedding_param(num_patches, embedding_dim, dtype=jnp.float32):
    """Deterministic init matching nn.Parameter(torch.ones(1, P, D))."""
    return jnp.ones((1, num_patches, embedding_dim), dtype=dtype)


if __name__ == "__main__":
    key = jax.random.PRNGKey(0)

    # --- Primary case: module-consistent small shapes, constant-ones init ---
    num_patches = 16
    embedding_dim = 128
    pos_emb = make_positional_embedding_param(num_patches, embedding_dim)

    out = positional_embedding_forward(pos_emb)
    out = jax.block_until_ready(out)
    assert out.shape == (1, num_patches, embedding_dim)
    assert out.dtype == pos_emb.dtype
    assert bool(jnp.array_equal(out, pos_emb))

    # --- Non-multiple patch count (e.g. 197 = 14*14 + CLS token) ---
    k1, k2 = jax.random.split(key)
    pe_cls = jax.random.normal(k1, (1, 197, 96), dtype=jnp.float32)
    out_cls = jax.block_until_ready(positional_embedding_forward(pe_cls))
    assert bool(jnp.array_equal(out_cls, pe_cls))

    # --- Forced multi-step tiled path (small VMEM budget), incl. remainder ---
    pe_big = jax.random.normal(k2, (1, 200, 256), dtype=jnp.float32)
    out_big = jax.block_until_ready(
        positional_embedding_forward(pe_big, vmem_tile_bytes=64 * 1024)
    )
    assert bool(jnp.array_equal(out_big, pe_big))

    print("KERNEL_OK")
</pallas_src>

<mosaic_0001>
module attributes {stable_mosaic.version = 11 : i64} {
  func.func @_pos_emb_kernel(%arg0: i32, %arg1: memref<16x128xf32, #tpu.memory_space<vmem>>, %arg2: memref<16x128xf32, #tpu.memory_space<vmem>>) attributes {dimension_semantics = [#tpu.dimension_semantics<parallel>], iteration_bounds = array<i64: 1>, scalar_prefetch = 0 : i64, scratch_operands = 0 : i64, tpu.core_type = #tpu.core_type<tc>, window_params = [{transform_indices = @transform_0, window_bounds = array<i64: 16, 128>}, {transform_indices = @transform_1, window_bounds = array<i64: 16, 128>}]} {
    %c0 = arith.constant 0 : index
    %c0_0 = arith.constant 0 : index
    %0 = vector.load %arg1[%c0, %c0_0] : memref<16x128xf32, #tpu.memory_space<vmem>>, vector<16x128xf32>
    %c0_1 = arith.constant 0 : index
    %c0_2 = arith.constant 0 : index
    %1 = vector.load %arg2[%c0_1, %c0_2] : memref<16x128xf32, #tpu.memory_space<vmem>>, vector<16x128xf32>
    tpu.vector_store %arg2[%c0_1, %c0_2], %0 {strides = array<i32>} : memref<16x128xf32, #tpu.memory_space<vmem>>, vector<16x128xf32>,
    return
  }
  func.func @transform_0(%arg0: i32) -> (i32, i32) {
    %c0_i32 = arith.constant 0 : i32
    %c0_i32_0 = arith.constant 0 : i32
    return %arg0, %c0_i32 : i32, i32
  }
  func.func @transform_1(%arg0: i32) -> (i32, i32) {
    %c0_i32 = arith.constant 0 : i32
    %c0_i32_0 = arith.constant 0 : i32
    return %arg0, %c0_i32 : i32, i32
  }
}

</mosaic_0001>

<bundles_post_ra>
// kernel: tpu_custom_call.1
= control target key start
LH: loop header
LB: loop body
LE: loop exit
PB: predicated region body
PF: predicated region fallthrough
CT: control target
= control target key end

     0   :  { %6 = vsyncpa [#allocation3], 0  ;;  %s134_s0 = inlined_call_operand.hbm [shape: f32[16,128], index: 0, kind: input, shape index: {}, may-alias: {0,1}]   ;;  %s135_s1 = inlined_call_operand.hbm [shape: f32[16,128], index: 1, kind: output, shape index: {}, may-alias: {0,1}]  }
   0x1   :  { %7 = vsyncpa [#allocation4], 0  ;;  %s96_s6 = smov [#allocation2]   ;;  %s48_s10 = scalar_lea.hbm %s134_s0, 256 }
   0x2   :  { %s13_s7 = sshll.u32 %s96_s6, 4  ;;  %p49_p0 = scmp.ne.s32.totalorder %s134_s0, %s48_s10  ;;  %s14_s7 = int_to_ptr.vmem [resolvable:$true] %s13_s7 }
   0x3   :  { %p52_p1 = scmp.lt.u32.totalorder %s48_s10, %s134_s0 }
   0x5   :  { %p54_p2 = pnand %p52_p1, %p49_p0 }
   0x7   :  { %57 = shalt.err (!%p54_p2)
}
   0x8   :  { %s58_s15 = scalar_lea.vmem %s14_s7, 256  ;;  %p63_p4 = scmp.lt.s32.totalorder %s14_s7, %s14_s7 }
   0x9   :  { %p59_p3 = scmp.ne.s32.totalorder %s14_s7, %s58_s15  ;;  %p64_p5 = scmp.lt.s32.totalorder %s58_s15, %s58_s15 }
   0xb   :  { %p65_p6 = por %p64_p5, %p63_p4 }
   0xd   :  { %p66_p7 = pnand %p65_p6, %p59_p3 }
   0xf   :  { %69 = shalt.err (!%p66_p7)
}
  0x10   :  { %s97_s16 = smov 128   ;;  %s98_s17 = smov 8  }
  0x11   :  { %19 = dma.hbm_to_vmem [thread:$0]  %s134_s0, 256, %s14_s7, [#allocation3], %s97_s16, %s97_s16, %s98_s17  }
  0x12   :  { %92 = dma.done.wait [#allocation3], 256  }
  0x13   :  { %93 = vsyncadd [#allocation3], 4294967040  ;;  %s99_s20 = smov [#allocation5]   ;;  %v23_v0 = vld [vmem:[#allocation2] sm:$0xff]  ;;  %v24_v1 = vld [vmem:[#allocation2 + $0x8] sm:$0xff] }
  0x14   :  { %s32_s21 = sshll.u32 %s99_s20, 4  ;;  %25 = vst [vmem:[#allocation5] sm:$0xff] %v23_v0  ;;  %26 = vst [vmem:[#allocation5 + $0x8] sm:$0xff] %v24_v1  ;;  %s33_s21 = int_to_ptr.vmem [resolvable:$true] %s32_s21 }
  0x15   :  { %s70_s22 = scalar_lea.vmem %s33_s21, 256  ;;  %p75_p9 = scmp.lt.s32.totalorder %s33_s21, %s33_s21 }
  0x16   :  { %p71_p8 = scmp.ne.s32.totalorder %s33_s21, %s70_s22  ;;  %p76_p10 = scmp.lt.s32.totalorder %s70_s22, %s70_s22 }
  0x18   :  { %p77_p11 = por %p76_p10, %p75_p9 }
  0x1a   :  { %p78_p12 = pnand %p77_p11, %p71_p8 }
  0x1c   :  { %81 = shalt.err (!%p78_p12)
}
  0x1d   :  { %s82_s0 = scalar_lea.hbm %s135_s1, 256 }
  0x1e   :  { %p83_p13 = scmp.ne.s32.totalorder %s135_s1, %s82_s0  ;;  %p86_p0 = scmp.lt.u32.totalorder %s82_s0, %s135_s1 }
  0x20   :  { %p88_p1 = pnand %p86_p0, %p83_p13 }
  0x22   :  { %91 = shalt.err (!%p88_p1)
}
  0x23   :  { %38 = dma.vmem_to_hbm [thread:$0]  %s33_s21, 256, %s135_s1, [#allocation4], %s97_s16, %s97_s16, %s98_s17  }
  0x24   :  { %94 = dma.done.wait [#allocation4], 256  }
  0x25   :  { %95 = vsyncadd [#allocation4], 4294967040 }
  0x26   :  { %42 = vsyncpa [#allocation3], 1 }
  0x27   :  { %43 = vsyncpa [#allocation4], 1 }

</bundles_post_ra>
